<compile_context>
chip_gen: v5e
topology: v5e:2x2
jax: 0.10.0
libtpu: 0.0.40
codegen_flags: <defaults>
</compile_context>

<pallas_src>
import functools

import jax
import jax.numpy as jnp
from jax.experimental import pallas as pl
from jax.experimental.pallas import tpu as pltpu


def _round_up(x, m):
    return ((x + m - 1) // m) * m


def _vfl_kernel(packed_ref, out_ref, acc_ref, *, alpha, gamma, inv_dim1):
    i = pl.program_id(0)

    @pl.when(i == 0)
    def _init():
        acc_ref[0] = jnp.float32(0.0)

    x = packed_ref[0]      # (TILE_N, C)  pred_score logits
    y = packed_ref[1]      # (TILE_N, C)  gt_score
    lbl = packed_ref[2]    # (TILE_N, C)  label

    # weight = alpha * sigmoid(x)^gamma * (1 - label) + gt * label
    s = 1.0 / (1.0 + jnp.exp(-x))
    if gamma == 2.0:                      # static Python float -> trace-time branch
        s_pow = s * s
    else:
        s_pow = jnp.exp(jnp.float32(gamma) * jnp.log(s))
    weight = jnp.float32(alpha) * s_pow * (1.0 - lbl) + y * lbl

    # numerically stable BCE-with-logits (reduction='none'), all f32
    bce = jnp.maximum(x, 0.0) - x * y + jnp.log(1.0 + jnp.exp(-jnp.abs(x)))

    acc_ref[0] += jnp.sum(bce * weight)

    @pl.when(i == pl.num_programs(0) - 1)
    def _finalize():
        out_ref[0, 0] = acc_ref[0] * jnp.float32(inv_dim1)


def varifocal_loss(pred_score, gt_score, label, alpha=0.75, gamma=2.0,
                   tile_n=256):
    """VarifocalLoss forward.  (bce * w).mean(1).sum() == sum(bce * w) / dim1."""
    shape = pred_score.shape
    dim1 = shape[1]            # the dimension torch .mean(1) reduces over
    c = shape[-1]

    pred2 = pred_score.reshape(-1, c).astype(jnp.float32)
    gt2 = gt_score.reshape(-1, c).astype(jnp.float32)
    lbl2 = label.reshape(-1, c).astype(jnp.float32)
    n = pred2.shape[0]

    tn = min(_round_up(tile_n, 8), _round_up(n, 8))
    n_pad = _round_up(n, tn)
    pad = n_pad - n
    if pad:
        # Padding with label=1, gt=0, pred=0  =>  weight == 0  =>  adds 0.
        pred2 = jnp.pad(pred2, ((0, pad), (0, 0)))
        gt2 = jnp.pad(gt2, ((0, pad), (0, 0)))
        lbl2 = jnp.pad(lbl2, ((0, pad), (0, 0)), constant_values=1.0)

    packed = jnp.stack([pred2, gt2, lbl2], axis=0)   # (3, n_pad, C) contiguous

    kernel = functools.partial(_vfl_kernel, alpha=float(alpha),
                               gamma=float(gamma), inv_dim1=1.0 / float(dim1))

    out = pl.pallas_call(
        kernel,
        out_shape=jax.ShapeDtypeStruct((1, 1), jnp.float32),
        grid=(n_pad // tn,),
        in_specs=[pl.BlockSpec((3, tn, c), lambda i: (0, i, 0))],
        out_specs=pl.BlockSpec(memory_space=pltpu.MemorySpace.SMEM),
        scratch_shapes=[pltpu.SMEM((1,), jnp.float32)],
        compiler_params=pltpu.CompilerParams(
            dimension_semantics=("arbitrary",)),
    )(packed)
    return out[0, 0]


def _reference(pred_score, gt_score, label, alpha=0.75, gamma=2.0):
    weight = alpha * jax.nn.sigmoid(pred_score) ** gamma * (1.0 - label) + gt_score * label
    bce = (jnp.maximum(pred_score, 0.0) - pred_score * gt_score
           + jnp.log1p(jnp.exp(-jnp.abs(pred_score))))
    return jnp.sum(jnp.mean(bce * weight, axis=1))


if __name__ == "__main__":
    key = jax.random.PRNGKey(0)
    B, A, NC = 2, 84, 80          # (batch, anchors, classes) — small demo shapes
    k1, k2, k3 = jax.random.split(key, 3)

    pred_score = jax.random.normal(k1, (B, A, NC), dtype=jnp.float32) * 2.0
    label = (jax.random.uniform(k2, (B, A, NC)) > 0.9).astype(jnp.float32)
    gt_score = jax.random.uniform(k3, (B, A, NC), dtype=jnp.float32) * label

    # tile_n=64 -> 168 rows padded to 192, grid of 3: exercises the
    # accumulator init/accumulate/finalize path and the zero-weight padding.
    loss = varifocal_loss(pred_score, gt_score, label, tile_n=64)
    jax.block_until_ready(loss)

    ref = _reference(pred_score, gt_score, label)
    assert jnp.allclose(loss, ref, rtol=1e-4, atol=1e-5), (loss, ref)

    print("KERNEL_OK")
</pallas_src>

<mosaic_0001>
module attributes {stable_mosaic.version = 11 : i64} {
  func.func @_vfl_kernel(%arg0: i32, %arg1: memref<3x64x80xf32, #tpu.memory_space<vmem>>, %arg2: memref<1x1xf32, #tpu.memory_space<smem>>, %arg3: memref<1xf32, #tpu.memory_space<smem>>) attributes {dimension_semantics = [#tpu.dimension_semantics<arbitrary>], iteration_bounds = array<i64: 3>, scalar_prefetch = 0 : i64, scratch_operands = 1 : i64, tpu.core_type = #tpu.core_type<tc>, window_params = [{transform_indices = @transform_0, window_bounds = array<i64: 3, 64, 80>}, {transform_indices = @transform_1, window_bounds = array<i64: 1, 1>}]} {
    %c0_i32 = arith.constant 0 : i32
    %0 = arith.cmpi eq, %arg0, %c0_i32 : i32
    %1 = arith.extui %0 : i1 to i32
    %c0_i32_0 = arith.constant 0 : i32
    %2 = arith.cmpi ne, %1, %c0_i32_0 : i32
    scf.if %2 {
      %cst_18 = arith.constant 0.000000e+00 : f32
      %c0_19 = arith.constant 0 : index
      %47 = memref.load %arg3[%c0_19] : memref<1xf32, #tpu.memory_space<smem>>
      memref.store %cst_18, %arg3[%c0_19] : memref<1xf32, #tpu.memory_space<smem>>
    } else {
    }
    %c0 = arith.constant 0 : index
    %c0_1 = arith.constant 0 : index
    %c0_2 = arith.constant 0 : index
    %3 = vector.load %arg1[%c0, %c0_1, %c0_2] : memref<3x64x80xf32, #tpu.memory_space<vmem>>, vector<1x64x80xf32>
    %4 = vector.shape_cast %3 : vector<1x64x80xf32> to vector<64x80xf32>
    %c1 = arith.constant 1 : index
    %c0_3 = arith.constant 0 : index
    %c0_4 = arith.constant 0 : index
    %5 = vector.load %arg1[%c1, %c0_3, %c0_4] : memref<3x64x80xf32, #tpu.memory_space<vmem>>, vector<1x64x80xf32>
    %6 = vector.shape_cast %5 : vector<1x64x80xf32> to vector<64x80xf32>
    %c2 = arith.constant 2 : index
    %c0_5 = arith.constant 0 : index
    %c0_6 = arith.constant 0 : index
    %7 = vector.load %arg1[%c2, %c0_5, %c0_6] : memref<3x64x80xf32, #tpu.memory_space<vmem>>, vector<1x64x80xf32>
    %8 = vector.shape_cast %7 : vector<1x64x80xf32> to vector<64x80xf32>
    %cst = arith.constant 0.000000e+00 : f32
    %9 = vector.broadcast %cst : f32 to vector<64x80xf32>
    %10 = arith.subf %9, %4 : vector<64x80xf32>
    %11 = math.exp %10 : vector<64x80xf32>
    %cst_7 = arith.constant 1.000000e+00 : f32
    %12 = vector.broadcast %cst_7 : f32 to vector<64x80xf32>
    %13 = arith.addf %12, %11 : vector<64x80xf32>
    %cst_8 = arith.constant 1.000000e+00 : f32
    %14 = vector.broadcast %cst_8 : f32 to vector<64x80xf32>
    %15 = arith.divf %14, %13 : vector<64x80xf32>
    %16 = arith.mulf %15, %15 : vector<64x80xf32>
    %cst_9 = arith.constant 7.500000e-01 : f32
    %17 = vector.broadcast %cst_9 : f32 to vector<64x80xf32>
    %18 = arith.mulf %17, %16 : vector<64x80xf32>
    %cst_10 = arith.constant 1.000000e+00 : f32
    %19 = vector.broadcast %cst_10 : f32 to vector<64x80xf32>
    %20 = arith.subf %19, %8 : vector<64x80xf32>
    %21 = arith.mulf %18, %20 : vector<64x80xf32>
    %22 = arith.mulf %6, %8 : vector<64x80xf32>
    %23 = arith.addf %21, %22 : vector<64x80xf32>
    %cst_11 = arith.constant 0.000000e+00 : f32
    %24 = vector.broadcast %cst_11 : f32 to vector<64x80xf32>
    %25 = arith.maximumf %4, %24 : vector<64x80xf32>
    %26 = arith.mulf %4, %6 : vector<64x80xf32>
    %27 = arith.subf %25, %26 : vector<64x80xf32>
    %28 = math.absf %4 : vector<64x80xf32>
    %cst_12 = arith.constant 0.000000e+00 : f32
    %29 = vector.broadcast %cst_12 : f32 to vector<64x80xf32>
    %30 = arith.subf %29, %28 : vector<64x80xf32>
    %31 = math.exp %30 : vector<64x80xf32>
    %cst_13 = arith.constant 1.000000e+00 : f32
    %32 = vector.broadcast %cst_13 : f32 to vector<64x80xf32>
    %33 = arith.addf %32, %31 : vector<64x80xf32>
    %34 = math.log %33 : vector<64x80xf32>
    %35 = arith.addf %27, %34 : vector<64x80xf32>
    %c0_14 = arith.constant 0 : index
    %36 = memref.load %arg3[%c0_14] : memref<1xf32, #tpu.memory_space<smem>>
    %37 = arith.mulf %35, %23 : vector<64x80xf32>
    %38 = vector.shape_cast %37 : vector<64x80xf32> to vector<1x64x80xf32>
    %cst_15 = arith.constant dense<0.000000e+00> : vector<1xf32>
    %39 = vector.multi_reduction <add>, %38, %cst_15 [1, 2] : vector<1x64x80xf32> to vector<1xf32>
    %40 = vector.shape_cast %39 : vector<1xf32> to vector<1x1x1xf32>
    %41 = vector.extract %40[0, 0, 0] : f32 from vector<1x1x1xf32>
    %42 = arith.addf %36, %41 : f32
    %c0_16 = arith.constant 0 : index
    %43 = memref.load %arg3[%c0_16] : memref<1xf32, #tpu.memory_space<smem>>
    memref.store %42, %arg3[%c0_16] : memref<1xf32, #tpu.memory_space<smem>>
    %c2_i32 = arith.constant 2 : i32
    %44 = arith.cmpi eq, %arg0, %c2_i32 : i32
    %45 = arith.extui %44 : i1 to i32
    %c0_i32_17 = arith.constant 0 : i32
    %46 = arith.cmpi ne, %45, %c0_i32_17 : i32
    scf.if %46 {
      %c0_18 = arith.constant 0 : index
      %47 = memref.load %arg3[%c0_18] : memref<1xf32, #tpu.memory_space<smem>>
      %cst_19 = arith.constant 0.0119047621 : f32
      %48 = arith.mulf %47, %cst_19 : f32
      %c0_20 = arith.constant 0 : index
      %c0_21 = arith.constant 0 : index
      %49 = memref.load %arg2[%c0_20, %c0_21] : memref<1x1xf32, #tpu.memory_space<smem>>
      memref.store %48, %arg2[%c0_20, %c0_21] : memref<1x1xf32, #tpu.memory_space<smem>>
    } else {
    }
    return
  }
  func.func @transform_0(%arg0: i32) -> (i32, i32, i32) {
    %c0_i32 = arith.constant 0 : i32
    %c0_i32_0 = arith.constant 0 : i32
    %c0_i32_1 = arith.constant 0 : i32
    return %c0_i32, %arg0, %c0_i32_0 : i32, i32, i32
  }
  func.func @transform_1(%arg0: i32) -> (i32, i32) {
    %c0_i32 = arith.constant 0 : i32
    %c0_i32_0 = arith.constant 0 : i32
    %c0_i32_1 = arith.constant 0 : i32
    return %c0_i32, %c0_i32_0 : i32, i32
  }
}

</mosaic_0001>

<bundles_post_ra>
// kernel: tpu_custom_call.1
= control target key start
LH: loop header
LB: loop body
LE: loop exit
PB: predicated region body
PF: predicated region fallthrough
CT: control target
= control target key end

     0   :  { %6 = vsyncpa [#allocation5], 0  ;;  %s839_s6 = smov 0   ;;  %s841_s7 = smov 0   ;;  %s1357_s0 = inlined_call_operand.vmem [shape: f32[3,192,80], index: 0, kind: input, shape index: {}]   ;;  %s1358_s1 = inlined_call_operand.hbm [shape: f32[1,1], index: 1, kind: output, shape index: {}]  }
   0x1   :  { %s843_s8 = smov 0  }
   0x2 LB: > { %s650_s9 = sadd.s32 4294967295, %s825_s8   ;;  %s856_s10 = sadd.s32 1, %s825_s8   ;;  %s825_s8 = sphi %s843_s8, %s1391_s8   ;;  %s821_s7 = sphi %s841_s7, %s1390_s7   ;;  %s817_s6 = sphi %s839_s6, %s1389_s6  }
   0x3   : > { %s16_s11 = ssub.s32 %s825_s8, %s856_s10  ;;  %s19_s12 = sadd.s32 1, %s821_s7 }
   0x4   : > { %p17_p0 = scmp.eq.s32.totalorder %s16_s11, 0  ;;  %p26_p1 = scmp.ne.s32.totalorder %s821_s7, %s817_s6 }
   0x5   : > { %p27_p2 = scmp.eq.s32.totalorder %s825_s8, 0  ;;  %p652_p4 = scmp.ge.s32.totalorder %s825_s8, 3 }
   0x6   : > { %s865_s13 = scalar_select %p17_p0, %s821_s7, %s19_s12  }
   0x7   : > { %p28_p3 = por %p27_p2, %p26_p1  ;;  %73 = sbr.rel (%p652_p4) target bundleno = 40 (0x28), region = 16 }
   0xc   : > { %76 = sbr.rel (!%p28_p3) target bundleno = 40 (0x28), region = 20  ;;  %s78_s14 = sand.u32 (%p28_p3), 1, %s821_s7  }
   0xd   : > { %s678_s15 = sshll.u32 (%p28_p3), %s825_s8, 6  ;;  %s679_s16 = smul.u32 (%p28_p3), 192, %s78_s14 }
   0xe   : > { %s873_s19 = scalar_lea.vmem (%p28_p3), %s1357_s0, %s678_s15 }
   0xf   : > { %v158_v0 = vld [vmem:[%s873_s19] sm:$0xff] (%p28_p3)  ;;  %v160_v1 = vld [vmem:[%s873_s19 + $0x8] sm:$0xff] (%p28_p3)  ;;  %v162_v2 = vld [vmem:[%s873_s19 + $0x10] sm:$0xff] (%p28_p3)  ;;  %s878_s20 = scalar_lea.vmem (%p28_p3), [#allocation3], %s679_s16 }
  0x10   : > { %159 = vst [vmem:[%s878_s20] sm:$0xff] (%p28_p3), %v158_v0  ;;  %v164_v3 = vld [vmem:[%s873_s19 + $0x18] sm:$0xff] (%p28_p3)  ;;  %v166_v4 = vld [vmem:[%s873_s19 + $0x20] sm:$0xff] (%p28_p3)  ;;  %v168_v5 = vld [vmem:[%s873_s19 + $0x28] sm:$0xff] (%p28_p3) }
  0x11   : > { %161 = vst [vmem:[%s878_s20 + $0x8] sm:$0xff] %v160_v1  ;;  %v170_v6 = vld [vmem:[%s873_s19 + $0x30] sm:$0xff]  ;;  %v172_v7 = vld [vmem:[%s873_s19 + $0x38] sm:$0xff]  ;;  %v174_v8 = vld [vmem:[%s873_s19 + $0xc0] sm:$0xff] }
  0x12   : > { %163 = vst [vmem:[%s878_s20 + $0x10] sm:$0xff] %v162_v2  ;;  %v176_v9 = vld [vmem:[%s873_s19 + $0xc8] sm:$0xff]  ;;  %v178_v10 = vld [vmem:[%s873_s19 + $0xd0] sm:$0xff]  ;;  %v180_v11 = vld [vmem:[%s873_s19 + $0xd8] sm:$0xff] }
  0x13   : > { %165 = vst [vmem:[%s878_s20 + $0x18] sm:$0xff] %v164_v3  ;;  %v182_v12 = vld [vmem:[%s873_s19 + $0xe0] sm:$0xff]  ;;  %v184_v13 = vld [vmem:[%s873_s19 + $0xe8] sm:$0xff]  ;;  %v186_v14 = vld [vmem:[%s873_s19 + $0xf0] sm:$0xff] }
  0x14   : > { %167 = vst [vmem:[%s878_s20 + $0x20] sm:$0xff] %v166_v4  ;;  %v188_v15 = vld [vmem:[%s873_s19 + $0xf8] sm:$0xff]  ;;  %v190_v16 = vld [vmem:[%s873_s19 + $0x180] sm:$0xff]  ;;  %v192_v17 = vld [vmem:[%s873_s19 + $0x188] sm:$0xff] }
  0x15   : > { %169 = vst [vmem:[%s878_s20 + $0x28] sm:$0xff] %v168_v5  ;;  %v194_v18 = vld [vmem:[%s873_s19 + $0x190] sm:$0xff]  ;;  %v196_v19 = vld [vmem:[%s873_s19 + $0x198] sm:$0xff]  ;;  %v198_v20 = vld [vmem:[%s873_s19 + $0x1a0] sm:$0xff] }
  0x16   : > { %171 = vst [vmem:[%s878_s20 + $0x30] sm:$0xff] %v170_v6  ;;  %v200_v21 = vld [vmem:[%s873_s19 + $0x1a8] sm:$0xff]  ;;  %v202_v22 = vld [vmem:[%s873_s19 + $0x1b0] sm:$0xff]  ;;  %v204_v23 = vld [vmem:[%s873_s19 + $0x1b8] sm:$0xff] }
  0x17   : > { %173 = vst [vmem:[%s878_s20 + $0x38] sm:$0xff] %v172_v7 }
  0x18   : > { %175 = vst [vmem:[%s878_s20 + $0x40] sm:$0xff] %v174_v8 }
  0x19   : > { %177 = vst [vmem:[%s878_s20 + $0x48] sm:$0xff] %v176_v9 }
  0x1a   : > { %179 = vst [vmem:[%s878_s20 + $0x50] sm:$0xff] %v178_v10 }
  0x1b   : > { %181 = vst [vmem:[%s878_s20 + $0x58] sm:$0xff] %v180_v11 }
  0x1c   : > { %183 = vst [vmem:[%s878_s20 + $0x60] sm:$0xff] %v182_v12 }
  0x1d   : > { %185 = vst [vmem:[%s878_s20 + $0x68] sm:$0xff] %v184_v13 }
  0x1e   : > { %187 = vst [vmem:[%s878_s20 + $0x70] sm:$0xff] %v186_v14 }
  0x1f   : > { %189 = vst [vmem:[%s878_s20 + $0x78] sm:$0xff] %v188_v15 }
  0x20   : > { %191 = vst [vmem:[%s878_s20 + $0x80] sm:$0xff] %v190_v16 }
  0x21   : > { %193 = vst [vmem:[%s878_s20 + $0x88] sm:$0xff] %v192_v17 }
  0x22   : > { %195 = vst [vmem:[%s878_s20 + $0x90] sm:$0xff] %v194_v18 }
  0x23   : > { %197 = vst [vmem:[%s878_s20 + $0x98] sm:$0xff] %v196_v19 }
  0x24   : > { %199 = vst [vmem:[%s878_s20 + $0xa0] sm:$0xff] %v198_v20 }
  0x25   : > { %201 = vst [vmem:[%s878_s20 + $0xa8] sm:$0xff] %v200_v21 }
  0x26   : > { %203 = vst [vmem:[%s878_s20 + $0xb0] sm:$0xff] %v202_v22 }
  0x27   : > { %205 = vst [vmem:[%s878_s20 + $0xb8] sm:$0xff] %v204_v23 }
  0x28 PF: > { %p655_p5 = scmp.ge.s32.totalorder %s825_s8, 1  ;;  %p210_p6 = scmp.lt.s32.totalorder %s825_s8, 4 }
  0x2a   : > { %p211_p7 = pnand %p655_p5, %p210_p6 }
  0x2b   : > { %s217_s21 = sand.u32 (!%p211_p7), 1, %s817_s6   ;;  %p691_p8 = scmp.eq.s32.totalorder (!%p211_p7), %s650_s9, 0 }
  0x2c   : > { %214 = sbr.rel (%p211_p7) target bundleno = 325 (0x145), region = 58  ;;  %s827_s23 = smov (!%p211_p7), 0.0  }
  0x2d   : > { %s680_s22 = smul.u32 (!%p211_p7), 192, %s217_s21  ;;  %s603_s28 = sshll.u32 (!%p211_p7), %s1358_s1, 4  ;;  %s604_s28 = int_to_ptr.hbm [resolvable:$true] %s603_s28 }
  0x2e   : > { %p692_p9 = scmp.eq.s32.totalorder (!%p211_p7), %s650_s9, 2  ;;  %s828_s3 = smov (!%p211_p7), [#allocation4]  }
  0x2f   : > { %s930_s24 = scalar_lea.vmem (!%p211_p7), [#allocation3], %s680_s22 }
  0x31   : > { %684 = sst [smem:[#allocation2]] (%p691_p8), %s827_s23  ;;  %v933_v24 = vld [vmem:[%s930_s24] sm:$0xff]  ;;  %v936_v25 = vld [vmem:[%s930_s24 + $0x8] sm:$0xff]  ;;  %v939_v26 = vld [vmem:[%s930_s24 + $0x10] sm:$0xff] }
  0x32   : > { %v942_v27 = vld [vmem:[%s930_s24 + $0x18] sm:$0xff]  ;;  %v945_v28 = vld [vmem:[%s930_s24 + $0x20] sm:$0xff]  ;;  %v948_v29 = vld [vmem:[%s930_s24 + $0x28] sm:$0xff]  ;;  %v264_v30 = vsub.f32 0.0, %v933_v24  ;;  %v265_v31 = vsub.f32 0.0, %v936_v25  ;;  %v266_v32 = vsub.f32 0.0, %v939_v26 }
  0x33   : > { %v267_v33 = vsub.f32 0.0, %v942_v27  ;;  %v268_v34 = vsub.f32 0.0, %v945_v28  ;;  %v269_v35 = vsub.f32 0.0, %v948_v29  ;;  %v957_v37 = vld [vmem:[%s930_s24 + $0x30] sm:$0xff]  ;;  %v963_v49 = vld [vmem:[%s930_s24 + $0x38] sm:$0xff]  ;;  %v986_v63 = vld [vmem:[%s930_s24 + $0x80] sm:$0xff] }
  0x34   : > { %v272_v36 = vmul.f32 1.442695, %v264_v30  ;;  %v274_v38 = vmul.f32 1.442695, %v265_v31  ;;  %v276_v39 = vmul.f32 1.442695, %v266_v32 }
  0x35   : > { %v278_v40 = vmul.f32 1.442695, %v267_v33  ;;  %v270_v41 = vsub.f32 0.0, %v957_v37  ;;  %v280_v42 = vmul.f32 1.442695, %v268_v34  ;;  %v271_v56 = vsub.f32 0.0, %v963_v49 }
  0x36   : > { %721 = vpow2.f32 %v272_v36  ;;  %v282_v43 = vmul.f32 1.442695, %v269_v35  ;;  %v992_v1 = vld [vmem:[%s930_s24 + $0x88] sm:$0xff]  ;;  %v1001_v5 = vld [vmem:[%s930_s24 + $0x90] sm:$0xff]  ;;  %v432_v7 = vsub.f32 1.0, %v986_v63  ;;  %s552_s25 = sld [smem:[#allocation2]] }
  0x37   : > { %723 = vpow2.f32 %v274_v38  ;;  %v284_v45 = vmul.f32 1.442695, %v270_v41  ;;  %v286_v59 = vmul.f32 1.442695, %v271_v56  ;;  %v488_v8 = vand.u32 2147483647, %v933_v24 }
  0x38   : > { %725 = vpow2.f32 %v276_v39  ;;  %v489_v9 = vand.u32 2147483647, %v936_v25  ;;  %v433_v11 = vsub.f32 1.0, %v992_v1  ;;  %v490_v12 = vand.u32 2147483647, %v939_v26 }
  0x39   : > { %727 = vpow2.f32 %v278_v40  ;;  %v491_v13 = vand.u32 2147483647, %v942_v27  ;;  %v434_v19 = vsub.f32 1.0, %v1001_v5  ;;  %v492_v20 = vand.u32 2147483647, %v945_v28 }
  0x3a   : > { %729 = vpow2.f32 %v280_v42  ;;  %v493_v21 = vand.u32 2147483647, %v948_v29 }
  0x3b   : > { %731 = vpow2.f32 %v282_v43 }
  0x3c   : > { %v722_v44 = vpop.eup %721  ;;  %733 = vpow2.f32 %v284_v45 }
  0x3d   : > { %v724_v46 = vpop.eup %723  ;;  %v960_v47 = vadd.f32 1.0, %v722_v44  ;;  %v1170_v44 = vld [vmem:[%s930_s24 + $0x98] sm:$0xff] }
  0x3e   : > { %v726_v48 = vpop.eup %725  ;;  %v965_v50 = vadd.f32 1.0, %v724_v46 }
  0x3f   : > { %v728_v51 = vpop.eup %727  ;;  %v967_v52 = vadd.f32 1.0, %v726_v48  ;;  %735 = vrcp.f32 %v960_v47  ;;  %v307_v14 = vand.u32 2147483648, %v960_v47  ;;  %vm301_vm0 = vweird.f32 %v960_v47 }
  0x40   : > { %v730_v53 = vpop.eup %729  ;;  %v969_v54 = vadd.f32 1.0, %v728_v51  ;;  %737 = vrcp.f32 %v965_v50  ;;  %v305_v30 = vand.u32 2147483647, %v960_v47  ;;  %vm316_vm1 = vweird.f32 %v965_v50 }
  0x41   : > { %v732_v55 = vpop.eup %731  ;;  %v972_v57 = vadd.f32 1.0, %v730_v53  ;;  %739 = vrcp.f32 %v967_v52  ;;  %v320_v32 = vand.u32 2147483647, %v965_v50  ;;  %v322_v33 = vand.u32 2147483648, %v965_v50 }
  0x42   : > { %v977_v58 = vadd.f32 1.0, %v732_v55  ;;  %741 = vrcp.f32 %v969_v54  ;;  %v734_v60 = vpop.eup %733  ;;  %v1033_v35 = vor.u32 1.1754944e-38, %v307_v14  ;;  %vm331_vm2 = vweird.f32 %v967_v52 }
  0x43   : > { %743 = vrcp.f32 %v972_v57  ;;  %v996_v3 = vadd.f32 1.0, %v734_v60  ;;  %v335_v41 = vand.u32 2147483647, %v967_v52  ;;  %vm1041_vm4 = vcmp.eq.f32.partialorder %v305_v30, 8.507059e+37 }
  0x44   : > { %745 = vrcp.f32 %v977_v58  ;;  %v337_v45 = vand.u32 2147483648, %v967_v52  ;;  %vm346_vm5 = vweird.f32 %v969_v54  ;;  %vm1051_vm7 = vcmp.eq.f32.partialorder %v320_v32, 8.507059e+37 }
  0x45   : > { %v981_v61 = vpop.eup %735  ;;  %747 = vpow2.f32 %v286_v59  ;;  %v350_v53 = vand.u32 2147483647, %v969_v54  ;;  %v352_v55 = vand.u32 2147483648, %v969_v54  ;;  %vm361_vm11 = vweird.f32 %v972_v57 }
  0x46   : > { %v983_v62 = vpop.eup %737  ;;  %v297_v6 = vmul.f32 %v981_v61, %v960_v47  ;;  %749 = vrcp.f32 %v996_v3  ;;  %vm302_vm3 = vweird.f32 %v981_v61  ;;  %v367_v47 = vand.u32 2147483648, %v972_v57 }
  0x47   : > { %v989_v0 = vpop.eup %739  ;;  %v312_v10 = vmul.f32 %v983_v62, %v965_v50  ;;  %vm317_vm6 = vweird.f32 %v983_v62  ;;  %vm1063_vm9 = vmor %vm301_vm0, %vm302_vm3  ;;  %vm376_vm15 = vweird.f32 %v977_v58  ;;  %v382_v32 = vand.u32 2147483648, %v977_v58 }
  0x48   : > { %v994_v2 = vpop.eup %741  ;;  %v327_v15 = vmul.f32 %v989_v0, %v967_v52  ;;  %v298_v23 = vsub.f32 1.0, %v297_v6  ;;  %vm332_vm8 = vweird.f32 %v989_v0  ;;  %vm1074_vm12 = vmor %vm316_vm1, %vm317_vm6 }
  0x49   : > { %v998_v4 = vpop.eup %743  ;;  %v342_v16 = vmul.f32 %v994_v2, %v969_v54  ;;  %v313_v31 = vsub.f32 1.0, %v312_v10  ;;  %vm347_vm10 = vweird.f32 %v994_v2  ;;  %v365_v10 = vand.u32 2147483647, %v972_v57  ;;  %vm1085_vm14 = vmor %vm331_vm2, %vm332_vm8 }
  0x4a   : > { %v357_v17 = vmul.f32 %v998_v4, %v972_v57  ;;  %v1020_v18 = vpop.eup %745  ;;  %v328_v36 = vsub.f32 1.0, %v327_v15  ;;  %v299_v43 = vmul.f32 %v981_v61, %v298_v23  ;;  %vm362_vm13 = vweird.f32 %v998_v4  ;;  %vm1098_vm1 = vmor %vm346_vm5, %vm347_vm10  ;;  %v1205_v57 = vld [vmem:[%s930_s24 + $0xa8] sm:$0xff] }
  0x4b   : > { %v748_v22 = vpop.eup %747  ;;  %v372_v34 = vmul.f32 %v1020_v18, %v977_v58  ;;  %v343_v38 = vsub.f32 1.0, %v342_v16  ;;  %v314_v48 = vmul.f32 %v983_v62, %v313_v31  ;;  %vm377_vm0 = vweird.f32 %v1020_v18  ;;  %vm1112_vm3 = vmor %vm361_vm11, %vm362_vm13  ;;  %v1180_v16 = vld [vmem:[%s930_s24 + $0x48] sm:$0xff] }
  0x4c   : > { %v358_v39 = vsub.f32 1.0, %v357_v17  ;;  %v1035_v40 = vadd.f32 1.0, %v748_v22  ;;  %v1047_v46 = vpop.eup %749  ;;  %v329_v56 = vmul.f32 %v989_v0, %v328_v36  ;;  %v300_v15 = vadd.f32 %v981_v61, %v299_v43  ;;  %vm1129_vm6 = vmor %vm376_vm15, %vm377_vm0 }
  0x4d   : > { %v373_v42 = vsub.f32 1.0, %v372_v34  ;;  %v344_v59 = vmul.f32 %v994_v2, %v343_v38  ;;  %v387_v17 = vmul.f32 %v1047_v46, %v996_v3  ;;  %v315_v22 = vadd.f32 %v983_v62, %v314_v48  ;;  %v1194_v38 = vld [vmem:[%s930_s24 + $0xa0] sm:$0xff] }
  0x4e   : > { %v359_v60 = vmul.f32 %v998_v4, %v358_v39  ;;  %751 = vrcp.f32 %v1035_v40  ;;  %v330_v50 = vadd.f32 %v989_v0, %v329_v56  ;;  %v323_v34 = vor.u32 1.1754944e-38, %v322_v33 }
  0x4f   : > { %v374_v14 = vmul.f32 %v1020_v18, %v373_v42  ;;  %v345_v30 = vadd.f32 %v994_v2, %v344_v59  ;;  %vm1104_vm2 = vcmp.eq.f32.partialorder %v335_v41, 8.507059e+37  ;;  %v380_v39 = vand.u32 2147483647, %v977_v58 }
  0x50   : > { %v360_v31 = vadd.f32 %v998_v4, %v359_v60  ;;  %v304_v33 = vsel %vm1063_vm9, %v981_v61, %v300_v15  ;;  %v338_v41 = vor.u32 1.1754944e-38, %v337_v45  ;;  %vm1121_vm5 = vcmp.eq.f32.partialorder %v350_v53, 8.507059e+37  ;;  %v1152_v60 = vld [vmem:[%s930_s24 + $0x40] sm:$0xff]  ;;  %v1213_v61 = vld [vmem:[%s930_s24 + $0xb0] sm:$0xff] }
  0x51   : > { %v375_v54 = vadd.f32 %v1020_v18, %v374_v14  ;;  %v388_v43 = vsub.f32 1.0, %v387_v17  ;;  %v319_v48 = vsel %vm1074_vm12, %v983_v62, %v315_v22  ;;  %v353_v56 = vor.u32 1.1754944e-38, %v352_v55 }
  0x52   : > { %vm1136_vm8 = vcmp.eq.f32.partialorder %v365_v10, 8.507059e+37  ;;  %v368_v45 = vor.u32 1.1754944e-38, %v367_v47  ;;  %v334_v58 = vsel %vm1085_vm14, %v989_v0, %v330_v50  ;;  %v349_v53 = vsel %vm1098_vm1, %v994_v2, %v345_v30 }
  0x53   : > { %v364_v59 = vsel %vm1112_vm3, %v998_v4, %v360_v31  ;;  %v383_v62 = vor.u32 1.1754944e-38, %v382_v32  ;;  %v309_v6 = vsel %vm1041_vm4, %v1033_v35, %v304_v33  ;;  %v379_v0 = vsel %vm1129_vm6, %v1020_v18, %v375_v54 }
  0x54   : > { %v1149_v55 = vpop.eup %751  ;;  %vm381_vm9 = vcmp.eq.f32.partialorder %v380_v39, 8.507059e+37  ;;  %v494_v2 = vand.u32 2147483647, %v957_v37  ;;  %v324_v4 = vsel %vm1051_vm7, %v323_v34, %v319_v48  ;;  %v389_v10 = vmul.f32 %v1047_v46, %v388_v43  ;;  %v660_v43 = vld [vmem:[%s930_s24 + $0x58] sm:$0xff] }
  0x55   : > { %vm391_vm10 = vweird.f32 %v996_v3  ;;  %v1167_v14 = vmul.f32 %v986_v63, %v1152_v60  ;;  %v339_v35 = vsel %vm1104_vm2, %v338_v41, %v334_v58  ;;  %v354_v18 = vsel %vm1121_vm5, %v353_v56, %v349_v53 }
  0x56   : > { %v369_v51 = vsel %vm1136_vm8, %v368_v45, %v364_v59  ;;  %v395_v15 = vand.u32 2147483647, %v996_v3  ;;  %v384_v47 = vsel %vm381_vm9, %v383_v62, %v379_v0  ;;  %vm392_vm4 = vweird.f32 %v1047_v46  ;;  %v1216_v45 = vld [vmem:[%s930_s24 + $0xb8] sm:$0xff] }
  0x57   : > { %v402_v17 = vmul.f32 %v1149_v55, %v1035_v40  ;;  %v416_v22 = vmul.f32 %v309_v6, %v309_v6  ;;  %v397_v23 = vand.u32 2147483648, %v996_v3  ;;  %v412_v50 = vand.u32 2147483648, %v1035_v40  ;;  %vm1198_vm7 = vmor %vm391_vm10, %vm392_vm4 }
  0x58   : > { %v417_v30 = vmul.f32 %v324_v4, %v324_v4  ;;  %v1189_v52 = vmul.f32 %v992_v1, %v1180_v16  ;;  %v390_v31 = vadd.f32 %v1047_v46, %v389_v10  ;;  %v418_v32 = vmul.f32 %v339_v35, %v339_v35 }
  0x59   : > { %v419_v34 = vmul.f32 %v354_v18, %v354_v18  ;;  %v435_v36 = vsub.f32 1.0, %v1170_v44  ;;  %v420_v39 = vmul.f32 %v369_v51, %v369_v51  ;;  %v421_v33 = vmul.f32 %v384_v47, %v384_v47 }
  0x5a   : > { %v464_v41 = vmax.f32 %v933_v24, 0.0  ;;  %v465_v42 = vmax.f32 %v936_v25, 0.0  ;;  %vm1207_vm11 = vcmp.eq.f32.partialorder %v395_v15, 8.507059e+37  ;;  %v403_v48 = vsub.f32 1.0, %v402_v17 }
  0x5b   : > { %v410_v56 = vand.u32 2147483647, %v1035_v40  ;;  %v424_v3 = vmul.f32 0.75, %v416_v22  ;;  %v398_v58 = vor.u32 1.1754944e-38, %v397_v23  ;;  %vm406_vm12 = vweird.f32 %v1035_v40  ;;  %v661_v40 = vld [vmem:[%s930_s24 + $0x60] sm:$0xff] }
  0x5c   : > { %v1219_v53 = vor.u32 1.1754944e-38, %v412_v50  ;;  %v425_v59 = vmul.f32 0.75, %v417_v30  ;;  %v394_v62 = vsel %vm1198_vm7, %v1047_v46, %v390_v31  ;;  %vm407_vm13 = vweird.f32 %v1149_v55 }
  0x5d   : > { %v426_v6 = vmul.f32 0.75, %v418_v32  ;;  %v427_v0 = vmul.f32 0.75, %v419_v34  ;;  %v428_v4 = vmul.f32 0.75, %v420_v39  ;;  %v429_v10 = vmul.f32 0.75, %v421_v33  ;;  %vm1258_vm15 = vmor %vm406_vm12, %vm407_vm13  ;;  %v659_v33 = vld [vmem:[%s930_s24 + $0x50] sm:$0xff] }
  0x5e   : > { %v436_v35 = vsub.f32 1.0, %v1194_v38  ;;  %v437_v18 = vsub.f32 1.0, %v1205_v57  ;;  %v404_v51 = vmul.f32 %v1149_v55, %v403_v48  ;;  %vm1228_vm14 = vcmp.eq.f32.partialorder %v410_v56, 8.507059e+37 }
  0x5f   : > { %v438_v47 = vsub.f32 1.0, %v1213_v61  ;;  %v439_v46 = vsub.f32 1.0, %v1216_v45  ;;  %v440_v17 = vmul.f32 %v432_v7, %v424_v3  ;;  %v399_v22 = vsel %vm1207_vm11, %v398_v58, %v394_v62 }
  0x60   : > { %v441_v23 = vmul.f32 %v433_v11, %v425_v59  ;;  %v495_v50 = vand.u32 2147483647, %v963_v49  ;;  %v496_v30 = vsub.f32 0.0, %v488_v8  ;;  %v497_v31 = vsub.f32 0.0, %v489_v9 }
  0x61   : > { %v498_v32 = vsub.f32 0.0, %v490_v12  ;;  %v499_v63 = vsub.f32 0.0, %v491_v13  ;;  %v500_v1 = vsub.f32 0.0, %v492_v20  ;;  %v501_v7 = vsub.f32 0.0, %v493_v21 }
  0x62   : > { %v502_v11 = vsub.f32 0.0, %v494_v2  ;;  %v503_v34 = vsub.f32 0.0, %v495_v50  ;;  %v504_v8 = vmul.f32 1.442695, %v496_v30  ;;  %v405_v9 = vadd.f32 %v1149_v55, %v404_v51  ;;  %v662_v51 = vld [vmem:[%s930_s24 + $0x68] sm:$0xff] }
  0x63   : > { %v506_v54 = vmul.f32 1.442695, %v497_v31  ;;  %v508_v39 = vmul.f32 1.442695, %v498_v32  ;;  %v510_v12 = vmul.f32 1.442695, %v499_v63  ;;  %v422_v20 = vmul.f32 %v399_v22, %v399_v22 }
  0x64   : > { %v442_v21 = vmul.f32 %v434_v19, %v426_v6  ;;  %753 = vpow2.f32 %v504_v8  ;;  %v512_v2 = vmul.f32 1.442695, %v500_v1  ;;  %v443_v48 = vmul.f32 %v435_v36, %v427_v0  ;;  %v663_v36 = vld [vmem:[%s930_s24 + $0x70] sm:$0xff]  ;;  %v1276_v0 = vld [vmem:[%s930_s24 + $0x78] sm:$0xff] }
  0x65   : > { %v444_v56 = vmul.f32 %v436_v35, %v428_v4  ;;  %755 = vpow2.f32 %v506_v54  ;;  %v514_v3 = vmul.f32 1.442695, %v501_v7  ;;  %v450_v58 = vmul.f32 %v1001_v5, %v659_v33 }
  0x66   : > { %v451_v59 = vmul.f32 %v1170_v44, %v660_v43  ;;  %757 = vpow2.f32 %v508_v39  ;;  %v516_v62 = vmul.f32 1.442695, %v502_v11  ;;  %v409_v19 = vsel %vm1258_vm15, %v1149_v55, %v405_v9 }
  0x67   : > { %v452_v6 = vmul.f32 %v1194_v38, %v661_v40  ;;  %759 = vpow2.f32 %v510_v12  ;;  %v518_v22 = vmul.f32 1.442695, %v503_v34  ;;  %v430_v4 = vmul.f32 0.75, %v422_v20 }
  0x68   : > { %v445_v35 = vmul.f32 %v437_v18, %v429_v10  ;;  %v453_v5 = vmul.f32 %v1205_v57, %v662_v51  ;;  %761 = vpow2.f32 %v512_v2  ;;  %v454_v44 = vmul.f32 %v1213_v61, %v663_v36 }
  0x69   : > { %v1282_v50 = vmul.f32 %v1216_v45, %v1276_v0  ;;  %v1285_v55 = vadd.f32 %v1167_v14, %v440_v17  ;;  %763 = vpow2.f32 %v514_v3  ;;  %v414_v30 = vsel %vm1228_vm14, %v1219_v53, %v409_v19 }
  0x6a   : > { %v754_v38 = vpop.eup %753  ;;  %v1291_v10 = vadd.f32 %v1189_v52, %v441_v23  ;;  %v1293_v57 = vadd.f32 %v450_v58, %v442_v21  ;;  %765 = vpow2.f32 %v516_v62  ;;  %v1295_v18 = vadd.f32 %v451_v59, %v443_v48 }
  0x6b   : > { %v756_v61 = vpop.eup %755  ;;  %v1297_v31 = vadd.f32 %v452_v6, %v444_v56  ;;  %767 = vpow2.f32 %v518_v22  ;;  %v520_v14 = vadd.f32 1.0, %v754_v38  ;;  %v446_v32 = vmul.f32 %v438_v47, %v430_v4 }
  0x6c   : > { %v758_v17 = vpop.eup %757  ;;  %v1299_v63 = vadd.f32 %v453_v5, %v445_v35  ;;  %v466_v15 = vmax.f32 %v939_v26, 0.0  ;;  %v521_v53 = vadd.f32 1.0, %v756_v61  ;;  %v423_v52 = vmul.f32 %v414_v30, %v414_v30 }
  0x6d   : > { %v760_v1 = vpop.eup %759  ;;  %v467_v23 = vmax.f32 %v942_v27, 0.0  ;;  %v522_v7 = vadd.f32 1.0, %v758_v17  ;;  %769 = vlog2.f32 %v520_v14  ;;  %v468_v34 = vmax.f32 %v945_v28, 0.0 }
  0x6e   : > { %v762_v11 = vpop.eup %761  ;;  %v472_v8 = vmul.f32 %v1152_v60, %v933_v24  ;;  %v523_v9 = vadd.f32 1.0, %v760_v1  ;;  %771 = vlog2.f32 %v521_v53  ;;  %v469_v54 = vmax.f32 %v948_v29, 0.0 }
  0x6f   : > { %v764_v47 = vpop.eup %763  ;;  %v473_v39 = vmul.f32 %v1180_v16, %v936_v25  ;;  %v524_v12 = vadd.f32 1.0, %v762_v11  ;;  %773 = vlog2.f32 %v522_v7  ;;  %v1309_v20 = vadd.f32 %v454_v44, %v446_v32 }
  0x70   : > { %v766_v13 = vpop.eup %765  ;;  %v474_v21 = vmul.f32 %v659_v33, %v939_v26  ;;  %v525_v2 = vadd.f32 1.0, %v764_v47  ;;  %775 = vlog2.f32 %v523_v9  ;;  %v431_v56 = vmul.f32 0.75, %v423_v52 }
  0x71   : > { %v768_v48 = vpop.eup %767  ;;  %v475_v60 = vmul.f32 %v660_v43, %v942_v27  ;;  %v526_v3 = vadd.f32 1.0, %v766_v13  ;;  %777 = vlog2.f32 %v524_v12  ;;  %v476_v58 = vmul.f32 %v661_v40, %v945_v28 }
  0x72   : > { %v480_v16 = vsub.f32 %v464_v41, %v472_v8  ;;  %v527_v59 = vadd.f32 1.0, %v768_v48  ;;  %779 = vlog2.f32 %v525_v2  ;;  %v470_v19 = vmax.f32 %v957_v37, 0.0 }
  0x73   : > { %v770_v62 = vpop.eup %769  ;;  %v477_v26 = vmul.f32 %v662_v51, %v948_v29  ;;  %v481_v33 = vsub.f32 %v465_v42, %v473_v39  ;;  %781 = vlog2.f32 %v526_v3  ;;  %v478_v27 = vmul.f32 %v663_v36, %v957_v37 }
  0x74   : > { %v772_v6 = vpop.eup %771  ;;  %v482_v43 = vsub.f32 %v466_v15, %v474_v21  ;;  %v529_v22 = vmul.f32 0.6931472, %v770_v62  ;;  %783 = vlog2.f32 %v527_v59  ;;  %v471_v24 = vmax.f32 %v963_v49, 0.0 }
  0x75   : > { %v774_v28 = vpop.eup %773  ;;  %v479_v41 = vmul.f32 %v1276_v0, %v963_v49  ;;  %v483_v40 = vsub.f32 %v467_v23, %v475_v60  ;;  %v531_v4 = vmul.f32 0.6931472, %v772_v6  ;;  %v447_v25 = vmul.f32 %v439_v46, %v431_v56 }
  0x76   : > { %v776_v35 = vpop.eup %775  ;;  %v484_v29 = vsub.f32 %v468_v34, %v476_v58  ;;  %v533_v42 = vmul.f32 0.6931472, %v774_v28  ;;  %v544_v51 = vadd.f32 %v529_v22, %v480_v16  ;;  %v485_v37 = vsub.f32 %v469_v54, %v477_v26 }
  0x77   : > { %v778_v5 = vpop.eup %777  ;;  %v535_v36 = vmul.f32 0.6931472, %v776_v35  ;;  %v545_v44 = vadd.f32 %v531_v4, %v481_v33  ;;  %vm561_vm0 = vcmask 654336   ;;  %v486_v30 = vsub.f32 %v470_v19, %v478_v27 }
  0x78   : > { %v780_v38 = vpop.eup %779  ;;  %v537_v61 = vmul.f32 0.6931472, %v778_v5  ;;  %v546_v14 = vadd.f32 %v533_v42, %v482_v43  ;;  %v553_v49 = vmul.f32 %v544_v51, %v1285_v55  ;;  %v487_v17 = vsub.f32 %v471_v24, %v479_v41 }
  0x79   : > { %v782_v0 = vpop.eup %781  ;;  %v539_v32 = vmul.f32 0.6931472, %v780_v38  ;;  %v547_v15 = vadd.f32 %v535_v36, %v483_v40  ;;  %v554_v45 = vmul.f32 %v545_v44, %v1291_v10  ;;  %v463_v10 = vadd.f32 %v1282_v50, %v447_v25 }
  0x7a   : > { %v784_v46 = vpop.eup %783  ;;  %v541_v53 = vmul.f32 0.6931472, %v782_v0  ;;  %v548_v1 = vadd.f32 %v537_v61, %v484_v29  ;;  %v555_v52 = vmul.f32 %v546_v14, %v1293_v57  ;;  %v562_v23 = vsel %vm561_vm0, %v553_v49, 0.0 }
  0x7b   : > { %v543_v7 = vmul.f32 0.6931472, %v784_v46  ;;  %v549_v11 = vadd.f32 %v539_v32, %v485_v37  ;;  %v556_v34 = vmul.f32 %v547_v15, %v1295_v18  ;;  %v563_v8 = vsel %vm561_vm0, %v554_v45, 0.0 }
  0x7c   : > { %v550_v55 = vadd.f32 %v541_v53, %v486_v30  ;;  %v557_v9 = vmul.f32 %v548_v1, %v1297_v31  ;;  %v564_v47 = vadd.f32 %v563_v8, %v562_v23  ;;  %v565_v54 = vsel %vm561_vm0, %v555_v52, 0.0 }
  0x7d   : > { %v551_v39 = vadd.f32 %v543_v7, %v487_v17  ;;  %v558_v12 = vmul.f32 %v549_v11, %v1299_v63  ;;  %v567_v57 = vsel %vm561_vm0, %v556_v34, 0.0 }
  0x7e   : > { %v566_v13 = vadd.f32 %v565_v54, %v564_v47  ;;  %v559_v21 = vmul.f32 %v550_v55, %v1309_v20  ;;  %v569_v18 = vsel %vm561_vm0, %v557_v9, 0.0 }
  0x7f   : > { %v560_v48 = vmul.f32 %v551_v39, %v463_v10  ;;  %v571_v56 = vsel %vm561_vm0, %v558_v12, 0.0 }
  0x80   : > { %v568_v2 = vadd.f32 %v567_v57, %v566_v13  ;;  %v573_v60 = vsel %vm561_vm0, %v559_v21, 0.0 }
  0x81   : > { %v575_v50 = vsel %vm561_vm0, %v560_v48, 0.0 }
  0x82   : > { %v570_v31 = vadd.f32 %v569_v18, %v568_v2 }
  0x84   : > { %v572_v3 = vadd.f32 %v571_v56, %v570_v31 }
  0x86   : > { %v574_v58 = vadd.f32 %v573_v60, %v572_v3 }
  0x88   : > { %v576_v63 = vadd.f32 %v575_v50, %v574_v58 }
  0x8a   : > { %577 = vadd.xlane.f32.xlu0 %v576_v63 }
  0xfd   : > { %v578_v16 = vpop.xlane.xlu0 %577 }
  0xfe   : > { %v579_v59 = vrot.slane %v578_v16, 4 }
 0x100   : > { %v580_v62 = vadd.f32 %v579_v59, %v578_v16 }
 0x102   : > { %v581_v20 = vrot.slane %v580_v62, 2 }
 0x104   : > { %v582_v19 = vadd.f32 %v581_v20, %v580_v62 }
 0x106   : > { %v583_v26 = vrot.slane %v582_v19, 1 }
 0x108   : > { %v584_v33 = vadd.f32 %v583_v26, %v582_v19 }
 0x10a   : > { %681 = vpush %v584_v33 }
 0x13b   : > { %s682_s29 = spop %681 }
 0x13c   : > { %s586_s30 = sadd.f32 %s682_s29, %s552_s25 }
 0x13e   : > { %588 = sst [smem:[#allocation2]] %s586_s30  ;;  %s594_s2 = smul.f32 0.011904762, %s586_s30 }
 0x140   : > { %686 = sst [smem:[#allocation4]] (%p692_p9), %s594_s2 }
 0x141   : > { %688 = dma.smem_to_hbm (%p692_p9), %s828_s3, 16, %s604_s28, [#allocation5]  }
 0x142   : > { %812 = dma.done.wait (%p692_p9), [#allocation5], 16  }
 0x143   : > { %814 = vsyncadd (%p692_p9), [#allocation5], 4294967280 }
 0x144   : > { %612 = sfence }
 0x145 PF: > { %p9_p10 = scmp.ge.s32.totalorder %s856_s10, 5   ;;  %s1389_s6 = smov %s821_s7 }
 0x146   : > { %s1390_s7 = smov %s865_s13  ;;  %s1391_s8 = smov %s856_s10 }
 0x147   :  { %11 = sbr.rel (!%p9_p10) target bundleno = 2 (0x2), region = 107 }
 0x14c   :  { %618 = vsyncpa [#allocation5], 1 }
 0x14d   :  { %620 = vsyncpa [#allocation5 + $0x1], 1 }

</bundles_post_ra>
